<compile_context>
chip_gen: v6e
topology: v6e:2x2x1
jax: 0.10.0
libtpu: 0.0.40
codegen_flags: <defaults>
</compile_context>

<pallas_src>
import jax
import jax.numpy as jnp
from jax.experimental import pallas as pl
from jax.experimental.pallas import tpu as pltpu

EPS = 1e-5


# --------------------------------------------------------------------------
# kernels
# --------------------------------------------------------------------------
def _accum_channel_stats(stats_ref, t):
    """stats_ref: (2, Cout) grid-resident accumulator; t: (rows, Cout) f32."""
    s = jnp.concatenate(
        [jnp.sum(t, axis=0, keepdims=True),
         jnp.sum(t * t, axis=0, keepdims=True)], axis=0)

    @pl.when(pl.program_id(0) == 0)
    def _():
        stats_ref[...] = jnp.zeros_like(stats_ref)

    stats_ref[...] += s


def conv1_kernel(x_ref, w1_ref, t1_ref, stats_ref):
    """1x1 conv as a matmul over a row tile of the flattened (M, C) input."""
    t1 = jnp.dot(x_ref[...].astype(jnp.bfloat16), w1_ref[...],
                 preferred_element_type=jnp.float32)
    t1_ref[...] = t1
    _accum_channel_stats(stats_ref, t1)


def conv2_kernel(t1_ref, sc1_ref, sh1_ref, w2_ref, t2_ref, stats_ref):
    """BN1 + ReLU, then 3x3 conv (stride=1, pad=1) as ONE im2col matmul.

    One image (full H, W) per grid step, so the 3x3 halo never crosses a
    tile boundary and no padded VMEM scratch is needed.
    """
    _, H, W, P = t1_ref.shape
    sc = sc1_ref[...].reshape(1, 1, P)
    sh = sh1_ref[...].reshape(1, 1, P)
    a = jnp.maximum(t1_ref[...].reshape(H, W, P) * sc + sh, 0.0)
    a = a.astype(jnp.bfloat16)

    # zero-pad by one pixel on H and W (explicit concat, register-level).
    zr = jnp.zeros((1, W, P), jnp.bfloat16)
    zc = jnp.zeros((H + 2, 1, P), jnp.bfloat16)
    ap = jnp.concatenate([zr, a, zr], axis=0)          # (H+2, W,   P)
    ap = jnp.concatenate([zc, ap, zc], axis=1)         # (H+2, W+2, P)

    # im2col: 9 shifted views concatenated along channels -> (H*W, 9*P).
    cols = [ap[dy:dy + H, dx:dx + W, :].reshape(H * W, P)
            for dy in range(3) for dx in range(3)]
    patches = jnp.concatenate(cols, axis=-1)           # (H*W, 9*P) bf16

    t2 = jnp.dot(patches, w2_ref[...], preferred_element_type=jnp.float32)
    t2_ref[...] = t2.reshape(1, H, W, P)
    _accum_channel_stats(stats_ref, t2)


def conv3_kernel(t2_ref, sc2_ref, sh2_ref, w3_ref, t3_ref, stats_ref):
    """BN2 + ReLU, then 1x1 conv as a matmul over a row tile of (M, P)."""
    a = jnp.maximum(t2_ref[...] * sc2_ref[...] + sh2_ref[...], 0.0)
    t3 = jnp.dot(a.astype(jnp.bfloat16), w3_ref[...],
                 preferred_element_type=jnp.float32)
    t3_ref[...] = t3
    _accum_channel_stats(stats_ref, t3)


def finalize_kernel(t3_ref, x_ref, sc3_ref, sh3_ref, o_ref):
    """BN3 + residual add + ReLU; residual is re-read here (f32)."""
    o_ref[...] = jnp.maximum(
        t3_ref[...] * sc3_ref[...] + sh3_ref[...] + x_ref[...], 0.0)


# --------------------------------------------------------------------------
# wrapper
# --------------------------------------------------------------------------
def _bn_affine(stats, gamma, beta, count):
    """Fold training-mode BN (biased batch variance) into scale/shift (f32)."""
    mean = stats[0] / count
    var = jnp.maximum(stats[1] / count - mean * mean, 0.0)
    scale = gamma * jax.lax.rsqrt(var + EPS)
    shift = beta - mean * scale
    return (scale.reshape(1, -1).astype(jnp.float32),
            shift.reshape(1, -1).astype(jnp.float32))


def _pick_tile_m(M, target):
    """Largest row-tile <= target that is a multiple of 8 and divides M."""
    t = max(8, min(target, M) - (min(target, M) % 8))
    while t > 8 and M % t:
        t -= 8
    return t if M % t == 0 else M


def bottleneck_forward_nhwc(x_nhwc, params, *, tile_m=256):
    # TODO(synk): stride>1, dilation>1 and the downsample branch are not
    # implemented; the module defaults (stride=1, dilation=1, downsample=None)
    # are assumed, which requires inplanes == 4*planes for the residual add.
    N, H, W, C = x_nhwc.shape
    P = params["w1"].shape[0]
    assert C == 4 * P
    M = N * H * W
    TM = _pick_tile_m(M, tile_m)
    f32, bf16 = jnp.float32, jnp.bfloat16

    # Weights: PyTorch OIHW -> channels-last matmul layouts, bf16 for the MXU.
    w1 = jnp.transpose(params["w1"][:, :, 0, 0], (1, 0)).astype(bf16)      # (C, P)
    w2 = jnp.transpose(params["w2"], (2, 3, 1, 0)).reshape(9 * P, P)       # (9P, P)
    w2 = w2.astype(bf16)
    w3 = jnp.transpose(params["w3"][:, :, 0, 0], (1, 0)).astype(bf16)      # (P, C)

    x2d = x_nhwc.reshape(M, C).astype(f32)

    arb = pltpu.CompilerParams(dimension_semantics=("arbitrary",))
    par = pltpu.CompilerParams(dimension_semantics=("parallel",))

    # ---- stage 1: conv1 (1x1) + BN1 statistics ------------------------------
    t1, s1 = pl.pallas_call(
        conv1_kernel,
        grid=(M // TM,),
        in_specs=[pl.BlockSpec((TM, C), lambda i: (i, 0)),
                  pl.BlockSpec((C, P), lambda i: (0, 0))],
        out_specs=[pl.BlockSpec((TM, P), lambda i: (i, 0)),
                   pl.BlockSpec((2, P), lambda i: (0, 0))],
        out_shape=[jax.ShapeDtypeStruct((M, P), f32),
                   jax.ShapeDtypeStruct((2, P), f32)],
        compiler_params=arb,
    )(x2d, w1)
    sc1, sh1 = _bn_affine(s1, params["g1"], params["b1"], M)

    # ---- stage 2: BN1+ReLU -> conv2 (3x3 im2col) + BN2 statistics ------------
    t2, s2 = pl.pallas_call(
        conv2_kernel,
        grid=(N,),
        in_specs=[pl.BlockSpec((1, H, W, P), lambda n: (n, 0, 0, 0)),
                  pl.BlockSpec((1, P), lambda n: (0, 0)),
                  pl.BlockSpec((1, P), lambda n: (0, 0)),
                  pl.BlockSpec((9 * P, P), lambda n: (0, 0))],
        out_specs=[pl.BlockSpec((1, H, W, P), lambda n: (n, 0, 0, 0)),
                   pl.BlockSpec((2, P), lambda n: (0, 0))],
        out_shape=[jax.ShapeDtypeStruct((N, H, W, P), f32),
                   jax.ShapeDtypeStruct((2, P), f32)],
        compiler_params=arb,
    )(t1.reshape(N, H, W, P), sc1, sh1, w2)
    sc2, sh2 = _bn_affine(s2, params["g2"], params["b2"], M)

    # ---- stage 3: BN2+ReLU -> conv3 (1x1) + BN3 statistics -------------------
    t3, s3 = pl.pallas_call(
        conv3_kernel,
        grid=(M // TM,),
        in_specs=[pl.BlockSpec((TM, P), lambda i: (i, 0)),
                  pl.BlockSpec((1, P), lambda i: (0, 0)),
                  pl.BlockSpec((1, P), lambda i: (0, 0)),
                  pl.BlockSpec((P, C), lambda i: (0, 0))],
        out_specs=[pl.BlockSpec((TM, C), lambda i: (i, 0)),
                   pl.BlockSpec((2, C), lambda i: (0, 0))],
        out_shape=[jax.ShapeDtypeStruct((M, C), f32),
                   jax.ShapeDtypeStruct((2, C), f32)],
        compiler_params=arb,
    )(t2.reshape(M, P), sc2, sh2, w3)
    sc3, sh3 = _bn_affine(s3, params["g3"], params["b3"], M)

    # ---- stage 4: BN3 + residual + ReLU (parallel over row tiles) ------------
    out2d = pl.pallas_call(
        finalize_kernel,
        grid=(M // TM,),
        in_specs=[pl.BlockSpec((TM, C), lambda i: (i, 0)),
                  pl.BlockSpec((TM, C), lambda i: (i, 0)),
                  pl.BlockSpec((1, C), lambda i: (0, 0)),
                  pl.BlockSpec((1, C), lambda i: (0, 0))],
        out_specs=pl.BlockSpec((TM, C), lambda i: (i, 0)),
        out_shape=jax.ShapeDtypeStruct((M, C), f32),
        compiler_params=par,
    )(t3, x2d, sc3, sh3)

    return out2d.reshape(N, H, W, C)


def bottleneck_forward(x_nchw, params, *, tile_m=256):
    """NCHW in / NCHW out (PyTorch layout). The transposes live only at the
    module boundary; channels-last pipelines should call
    bottleneck_forward_nhwc directly and skip both of them."""
    x_nhwc = jnp.transpose(x_nchw, (0, 2, 3, 1))
    out = bottleneck_forward_nhwc(x_nhwc, params, tile_m=tile_m)
    return jnp.transpose(out, (0, 3, 1, 2))


# --------------------------------------------------------------------------
# pure-JAX reference (training-mode BN; convs fed bf16 like the kernel)
# --------------------------------------------------------------------------
def reference_forward(x, p):
    def conv(x, w, padding):
        return jax.lax.conv_general_dilated(
            x.astype(jnp.bfloat16), w.astype(jnp.bfloat16),
            window_strides=(1, 1), padding=[(padding, padding)] * 2,
            dimension_numbers=("NCHW", "OIHW", "NCHW"),
            preferred_element_type=jnp.float32)

    def bn(t, g, b):
        mu = t.mean(axis=(0, 2, 3), keepdims=True)
        var = ((t - mu) ** 2).mean(axis=(0, 2, 3), keepdims=True)
        return (t - mu) * jax.lax.rsqrt(var + EPS) * g.reshape(1, -1, 1, 1) \
            + b.reshape(1, -1, 1, 1)

    residual = x
    out = jax.nn.relu(bn(conv(x, p["w1"], 0), p["g1"], p["b1"]))
    out = jax.nn.relu(bn(conv(out, p["w2"], 1), p["g2"], p["b2"]))
    out = bn(conv(out, p["w3"], 0), p["g3"], p["b3"])
    return jax.nn.relu(out + residual)


def make_params(key, planes):
    inplanes = 4 * planes
    ks = jax.random.split(key, 9)
    he = lambda k, shape, fan_in: (jax.random.normal(k, shape, jnp.float32)
                                   * (2.0 / fan_in) ** 0.5)
    return {
        "w1": he(ks[0], (planes, inplanes, 1, 1), inplanes),
        "g1": 1.0 + 0.1 * jax.random.normal(ks[1], (planes,), jnp.float32),
        "b1": 0.1 * jax.random.normal(ks[2], (planes,), jnp.float32),
        "w2": he(ks[3], (planes, planes, 3, 3), 9 * planes),
        "g2": 1.0 + 0.1 * jax.random.normal(ks[4], (planes,), jnp.float32),
        "b2": 0.1 * jax.random.normal(ks[5], (planes,), jnp.float32),
        "w3": he(ks[6], (4 * planes, planes, 1, 1), planes),
        "g3": 1.0 + 0.1 * jax.random.normal(ks[7], (4 * planes,), jnp.float32),
        "b3": 0.1 * jax.random.normal(ks[8], (4 * planes,), jnp.float32),
    }


if __name__ == "__main__":
    key = jax.random.PRNGKey(0)
    k_x, k_p = jax.random.split(key)

    planes = 32                       # C = 128 -> lane-dense residual/output
    inplanes = 4 * planes             # downsample=None => inplanes == 4*planes
    N, H, W = 2, 16, 16
    x = jax.random.normal(k_x, (N, inplanes, H, W), jnp.float32)   # NCHW
    params = make_params(k_p, planes)

    out = jax.block_until_ready(bottleneck_forward(x, params, tile_m=256))
    ref = jax.block_until_ready(reference_forward(x, params))

    assert out.shape == (N, inplanes, H, W)
    max_err = float(jnp.max(jnp.abs(out - ref)))
    # bf16 MXU operands (f32 accumulation) in both kernel and reference;
    # residual/BN are f32, so 5e-3 is comfortably loose for rounding-order diffs.
    assert jnp.allclose(out, ref, atol=5e-3, rtol=5e-3), max_err
    print("KERNEL_OK")
</pallas_src>

<mosaic_0001>
module attributes {stable_mosaic.version = 11 : i64} {
  func.func @conv1_kernel(%arg0: i32, %arg1: memref<256x128xf32, #tpu.memory_space<vmem>>, %arg2: memref<128x32xbf16, #tpu.memory_space<vmem>>, %arg3: memref<256x32xf32, #tpu.memory_space<vmem>>, %arg4: memref<2x32xf32, #tpu.memory_space<vmem>>) attributes {dimension_semantics = [#tpu.dimension_semantics<arbitrary>], iteration_bounds = array<i64: 2>, scalar_prefetch = 0 : i64, scratch_operands = 0 : i64, tpu.core_type = #tpu.core_type<tc>, window_params = [{transform_indices = @transform_0, window_bounds = array<i64: 256, 128>}, {pipeline_mode = #tpu.pipeline_mode<synchronous>, transform_indices = @transform_1, window_bounds = array<i64: 128, 32>}, {transform_indices = @transform_2, window_bounds = array<i64: 256, 32>}, {pipeline_mode = #tpu.pipeline_mode<synchronous>, transform_indices = @transform_3, window_bounds = array<i64: 2, 32>}]} {
    %c0 = arith.constant 0 : index
    %c0_0 = arith.constant 0 : index
    %0 = vector.load %arg1[%c0, %c0_0] : memref<256x128xf32, #tpu.memory_space<vmem>>, vector<256x128xf32>
    %1 = arith.truncf %0 : vector<256x128xf32> to vector<256x128xbf16>
    %c0_1 = arith.constant 0 : index
    %c0_2 = arith.constant 0 : index
    %2 = vector.load %arg2[%c0_1, %c0_2] : memref<128x32xbf16, #tpu.memory_space<vmem>>, vector<128x32xbf16>
    %cst = arith.constant dense<0.000000e+00> : vector<256x32xf32>
    %3 = tpu.matmul %1, %2, %cst {dimension_numbers = #tpu.dot_dimension_numbers<[1], [0], [0], [1], [0, 0, 1, 1], [], []>} : vector<256x128xbf16>, vector<128x32xbf16>, vector<256x32xf32> -> vector<256x32xf32>
    %c0_3 = arith.constant 0 : index
    %c0_4 = arith.constant 0 : index
    %4 = vector.load %arg3[%c0_3, %c0_4] : memref<256x32xf32, #tpu.memory_space<vmem>>, vector<256x32xf32>
    tpu.vector_store %arg3[%c0_3, %c0_4], %3 {strides = array<i32>} : memref<256x32xf32, #tpu.memory_space<vmem>>, vector<256x32xf32>,
    %cst_5 = arith.constant dense<0.000000e+00> : vector<32xf32>
    %5 = vector.multi_reduction <add>, %3, %cst_5 [0] : vector<256x32xf32> to vector<32xf32>
    %6 = vector.shape_cast %5 : vector<32xf32> to vector<1x32xf32>
    %7 = arith.mulf %3, %3 : vector<256x32xf32>
    %cst_6 = arith.constant dense<0.000000e+00> : vector<32xf32>
    %8 = vector.multi_reduction <add>, %7, %cst_6 [0] : vector<256x32xf32> to vector<32xf32>
    %9 = vector.shape_cast %8 : vector<32xf32> to vector<1x32xf32>
    %10 = tpu.concatenate %6, %9 in 0 : vector<1x32xf32>, vector<1x32xf32> -> vector<2x32xf32>
    %c0_i32 = arith.constant 0 : i32
    %11 = arith.cmpi eq, %arg0, %c0_i32 : i32
    %12 = arith.extui %11 : i1 to i32
    %c0_i32_7 = arith.constant 0 : i32
    %13 = arith.cmpi ne, %12, %c0_i32_7 : i32
    scf.if %13 {
      %cst_12 = arith.constant 0.000000e+00 : f32
      %17 = vector.broadcast %cst_12 : f32 to vector<2x32xf32>
      %c0_13 = arith.constant 0 : index
      %c0_14 = arith.constant 0 : index
      %18 = vector.load %arg4[%c0_13, %c0_14] : memref<2x32xf32, #tpu.memory_space<vmem>>, vector<2x32xf32>
      tpu.vector_store %arg4[%c0_13, %c0_14], %17 {strides = array<i32>} : memref<2x32xf32, #tpu.memory_space<vmem>>, vector<2x32xf32>,
    } else {
    }
    %c0_8 = arith.constant 0 : index
    %c0_9 = arith.constant 0 : index
    %14 = vector.load %arg4[%c0_8, %c0_9] : memref<2x32xf32, #tpu.memory_space<vmem>>, vector<2x32xf32>
    %15 = arith.addf %14, %10 : vector<2x32xf32>
    %c0_10 = arith.constant 0 : index
    %c0_11 = arith.constant 0 : index
    %16 = vector.load %arg4[%c0_10, %c0_11] : memref<2x32xf32, #tpu.memory_space<vmem>>, vector<2x32xf32>
    tpu.vector_store %arg4[%c0_10, %c0_11], %15 {strides = array<i32>} : memref<2x32xf32, #tpu.memory_space<vmem>>, vector<2x32xf32>,
    return
  }
  func.func @transform_0(%arg0: i32) -> (i32, i32) {
    %c0_i32 = arith.constant 0 : i32
    %c0_i32_0 = arith.constant 0 : i32
    return %arg0, %c0_i32 : i32, i32
  }
  func.func @transform_1(%arg0: i32) -> (i32, i32) {
    %c0_i32 = arith.constant 0 : i32
    %c0_i32_0 = arith.constant 0 : i32
    %c0_i32_1 = arith.constant 0 : i32
    return %c0_i32, %c0_i32_0 : i32, i32
  }
  func.func @transform_2(%arg0: i32) -> (i32, i32) {
    %c0_i32 = arith.constant 0 : i32
    %c0_i32_0 = arith.constant 0 : i32
    return %arg0, %c0_i32 : i32, i32
  }
  func.func @transform_3(%arg0: i32) -> (i32, i32) {
    %c0_i32 = arith.constant 0 : i32
    %c0_i32_0 = arith.constant 0 : i32
    %c0_i32_1 = arith.constant 0 : i32
    return %c0_i32, %c0_i32_0 : i32, i32
  }
}

</mosaic_0001>

<bundles_post_ra>
// kernel: tpu_custom_call.1
= control target key start
LH: loop header
LB: loop body
LE: loop exit
PB: predicated region body
PF: predicated region fallthrough
CT: control target
= control target key end

     0   :  { %9 = vsyncpa [#allocation3], 0  ;;  %s1456_s0 = inlined_call_operand.hbm [shape: f32[512,128], index: 0, kind: input, shape index: {}]   ;;  %s1457_s1 = inlined_call_operand.vmem [shape: bf16[128,32], index: 1, kind: input, shape index: {}]   ;;  %s1458_s2 = inlined_call_operand.vmem [shape: f32[512,32], index: 2, kind: output, shape index: {0}]   ;;  %s1459_s3 = inlined_call_operand.hbm [shape: f32[2,32], index: 3, kind: output, shape index: {1}]  }
   0x1   :  { %11 = vsyncpa [#allocation3 + $0x1], 0 }
   0x2   :  { %12 = vsyncpa [#allocation4], 0  ;;  %s1059_s12 = smov 0   ;;  %s1061_s13 = smov 0  }
   0x3   :  { %s1063_s14 = smov 0   ;;  %s1065_s15 = smov 0  }
   0x4 LB: > { %s1078_s16 = sadd.s32 4294967295, %s1032_s15   ;;  %s1081_s17 = sadd.s32 1, %s1032_s15   ;;  %s1032_s15 = sphi %s1065_s15, %s1468_s15   ;;  %s1028_s14 = sphi %s1063_s14, %s1467_s14   ;;  %s1024_s13 = sphi %s1061_s13, %s1466_s13   ;;  %s1020_s12 = sphi %s1059_s12, %s1465_s12  }
   0x5   : > { %s22_s18 = ssub.s32 %s1032_s15, %s1081_s17  ;;  %s25_s19 = sadd.s32 1, %s1028_s14 }
   0x6   : > { %p23_p0 = scmp.eq.s32.totalorder %s22_s18, 0  ;;  %p32_p1 = scmp.ne.s32.totalorder %s1028_s14, %s1024_s13 }
   0x7   : > { %p33_p2 = scmp.eq.s32.totalorder %s1032_s15, 0  ;;  %p38_p3 = scmp.ne.s32.totalorder %s1024_s13, %s1020_s12 }
   0x8   : > { %s1091_s20 = scalar_select %p23_p0, %s1028_s14, %s25_s19  }
   0x9   : > { %p34_p4 = por %p33_p2, %p32_p1  ;;  %p39_p5 = scmp.eq.s32.totalorder %s1078_s16, 0 }
   0xa   : > { %p895_p6 = scmp.lt.s32.totalorder %s1032_s15, 2  ;;  %s133_s22 = sand.u32 1, %s1028_s14  }
   0xb   : > { %p1095_p7 = por %p39_p5, %p38_p3  ;;  %s776_s23 = sshll.u32 %s133_s22, 8 }
   0xc   : > { %s796_s24 = sshll.u32 %s1032_s15, 12  ;;  %s137_s28 = scalar_lea.vmem [#allocation2], %s776_s23 }
   0xd   : > { %s1461_s21 = scalar_select %p1095_p7, 1, 0 }
   0xe   : > { %s1104_s27 = scalar_lea.hbm %s1456_s0, %s796_s24  ;;  %s144_s29 = sshll.u32 %s137_s28, 4  ;;  %s1106_s29 = int_to_ptr.vmem [resolvable:$true] %s144_s29 }
   0xf   : > { %p1108_p8 = pnand %p895_p6, %p34_p4  ;;  %s1113_s4 = scalar_lea.sflag [#allocation3], %s133_s22 }
  0x10   : > { %s942_s5 = scalar_lea.hbm %s1104_s27, 4096  ;;  %s947_s8 = scalar_lea.hbm %s1456_s0, 8192 }
  0x11   : > { %p943_p10 = scmp.ne.s32.totalorder %s1104_s27, %s942_s5  ;;  %p944_p11 = pneg %p1108_p8 }
  0x12   : > { %p948_p0 = scmp.lt.s32.totalorder %s1104_s27, %s1456_s0  ;;  %p949_p1 = scmp.lt.s32.totalorder %s947_s8, %s942_s5 }
  0x13   : > { %p945_p12 = pnand %p944_p11, %p943_p10 }
  0x14   : > { %p950_p2 = por %p949_p1, %p948_p0 }
  0x15   : > { %p946_p13 = pneg %p945_p12 }
  0x17   : > { %p951_p3 = pnand %p950_p2, %p946_p13 }
  0x19   : > { %954 = shalt.err (!%p951_p3)
}
  0x1a   : > { %s955_s11 = scalar_lea.vmem %s1106_s29, 4096  ;;  %s1034_s12 = smov [#allocation2]  }
  0x1b   : > { %p956_p4 = scmp.ne.s32.totalorder %s1106_s29, %s955_s11  ;;  %s960_s18 = sshll.u32 %s1034_s12, 4  ;;  %s961_s18 = int_to_ptr.vmem [resolvable:$false] %s960_s18 }
  0x1c   : > { %s962_s19 = scalar_lea.vmem %s961_s18, 8192  ;;  %p963_p10 = scmp.lt.s32.totalorder %s1106_s29, %s961_s18 }
  0x1d   : > { %p958_p5 = pnand %p956_p4, %p944_p11  ;;  %p964_p12 = scmp.lt.s32.totalorder %s962_s19, %s955_s11 }
  0x1f   : > { %p959_p6 = pneg %p958_p5  ;;  %p965_p9 = por %p964_p12, %p963_p10 }
  0x21   : > { %p966_p7 = pnand %p965_p9, %p959_p6 }
  0x23   : > { %969 = shalt.err (!%p966_p7)
}
  0x24   : > { %s1035_s22 = smov 128   ;;  %s1036_s23 = smov 8  }
  0x25   : > { %894 = dma.hbm_to_vmem [thread:$0]  (!%p1108_p8), %s1104_s27, 4096, %s1106_s29, %s1113_s4, %s1035_s22, %s1035_s22, %s1036_s23  }
  0x26   : > { %p152_p11 = scmp.lt.s32.totalorder %s1032_s15, 3  ;;  %p1463_p13 = scmp.ge.s32.totalorder %s1032_s15, 1 }
  0x28   : > { %p153_p0 = pnand %p1463_p13, %p152_p11 }
  0x29   : > { %s158_s24 = sand.u32 (!%p153_p0), 1, %s1024_s13   ;;  %p1464_p7 = scmp.ne.s32.totalorder (!%p153_p0), %s1461_s21, 0 }
  0x2a   : > { %156 = sbr.rel (%p153_p0) target bundleno = 375 (0x177), region = 28  ;;  %s780_s25 = sshll.u32 (!%p153_p0), %s158_s24, 8 }
  0x2b   : > { %s159_s26 = scalar_lea.sflag (!%p153_p0), [#allocation3], %s158_s24  ;;  %s1138_s28 = scalar_lea.vmem (!%p153_p0), [#allocation2], %s780_s25 }
  0x2f   : > { %1011 = dma.done.wait (%p1464_p7), %s159_s26, 4096  }
  0x30   : > { %1013 = vsyncadd (%p1464_p7), %s159_s26, 4294963200  ;;  %v934_v0 = vld [vmem:[%s1457_s1 + $0x38] sm:$0xff]   ;;  %v935_v1 = vld [vmem:[%s1457_s1 + $0x30] sm:$0xff]   ;;  %s781_s22 = sshll.u32 %s1078_s16, 5  ;;  %vm466_vm0 = vcmask 261120   ;;  %vm669_vm1 = vcmask 1040384  }
  0x31   : > { %821 = vmatprep.subr.bf16.mxu0 %v934_v0  ;;  %869 = vmatprep.subr.bf16.mxu1 %v934_v0  ;;  %v936_v2 = vld [vmem:[%s1457_s1 + $0x28] sm:$0xff]   ;;  %v937_v3 = vld [vmem:[%s1457_s1 + $0x20] sm:$0xff]   ;;  %v938_v7 = vld [vmem:[%s1457_s1 + $0x18] sm:$0xff]   ;;  %p187_p8 = scmp.lt.s32.totalorder %s781_s22, 63  ;;  %p791_p9 = scmp.ne.s32.totalorder %s1078_s16, 0 }
  0x32   : > { %822 = vmatpush3.bf16.msra.mxu0 %v934_v0  ;;  %877 = vmatpush3.bf16.msra.mxu1 %v934_v0  ;;  %v193_v4 = vld [vmem:[%s1138_s28] sm:$0xff]  ;;  %v194_v5 = vld [vmem:[%s1138_s28 + $0x8] sm:$0xff]  ;;  %v939_v11 = vld [vmem:[%s1457_s1 + $0x10] sm:$0xff]  }
  0x33   : > { %823 = vmatprep.subr.bf16.mxu0 %v935_v1  ;;  %870 = vmatprep.subr.bf16.mxu1 %v935_v1  ;;  %v225_v6 = vpack.c.bf16 %v194_v5, %v193_v4  ;;  %v209_v8 = vld [vmem:[%s1138_s28 + $0x80] sm:$0xff]  ;;  %v210_v9 = vld [vmem:[%s1138_s28 + $0x88] sm:$0xff]  ;;  %v195_v14 = vld [vmem:[%s1138_s28 + $0x10] sm:$0xff]  ;;  %s1470_s22 = smov (!%p187_p8, %s781_s22), 63 }
  0x34   : > { %v233_v10 = vpack.c.bf16 %v210_v9, %v209_v8  ;;  %v940_v12 = vld [vmem:[%s1457_s1 + $0x8] sm:$0xff]   ;;  %v941_v13 = vld [vmem:[%s1457_s1] sm:$0xff]   ;;  %v196_v15 = vld [vmem:[%s1138_s28 + $0x18] sm:$0xff]  ;;  %s782_s23 = sshll.u32 %s1470_s22, 3 }
  0x35   : > { %837 = vmatprep.mubr.bf16.mxu0 %v225_v6  ;;  %v197_v16 = vld [vmem:[%s1138_s28 + $0x20] sm:$0xff]  ;;  %v198_v17 = vld [vmem:[%s1138_s28 + $0x28] sm:$0xff]  ;;  %v211_v18 = vld [vmem:[%s1138_s28 + $0x90] sm:$0xff]  ;;  %v226_v22 = vpack.c.bf16 %v196_v15, %v195_v14  ;;  %s1204_s26 = scalar_lea.vmem %s1458_s2, %s782_s23 }
  0x36   : > { %824 = vmatpush3.bf16.msra.mxu0 %v935_v1  ;;  %878 = vmatpush3.bf16.msra.mxu1 %v935_v1  ;;  %v212_v19 = vld [vmem:[%s1138_s28 + $0x98] sm:$0xff]  ;;  %v213_v20 = vld [vmem:[%s1138_s28 + $0xa0] sm:$0xff]  ;;  %v214_v21 = vld [vmem:[%s1138_s28 + $0xa8] sm:$0xff]  ;;  %v227_v23 = vpack.c.bf16 %v198_v17, %v197_v16 }
  0x37   : > { %825 = vmatprep.subr.bf16.mxu0 %v936_v2  ;;  %871 = vmatprep.subr.bf16.mxu1 %v936_v2  ;;  %v234_v24 = vpack.c.bf16 %v212_v19, %v211_v18  ;;  %v235_v25 = vpack.c.bf16 %v214_v21, %v213_v20  ;;  %v199_v26 = vld [vmem:[%s1138_s28 + $0x30] sm:$0xff]  ;;  %v200_v27 = vld [vmem:[%s1138_s28 + $0x38] sm:$0xff]  ;;  %v201_v28 = vld [vmem:[%s1138_s28 + $0x40] sm:$0xff] }
  0x38   : > { %853 = vmatprep.mubr.bf16.mxu1 %v233_v10  ;;  %v202_v29 = vld [vmem:[%s1138_s28 + $0x48] sm:$0xff]  ;;  %v215_v30 = vld [vmem:[%s1138_s28 + $0xb0] sm:$0xff]  ;;  %v216_v31 = vld [vmem:[%s1138_s28 + $0xb8] sm:$0xff]  ;;  %v228_v34 = vpack.c.bf16 %v200_v27, %v199_v26 }
  0x39   : > { %v217_v32 = vld [vmem:[%s1138_s28 + $0xc0] sm:$0xff]  ;;  %v218_v33 = vld [vmem:[%s1138_s28 + $0xc8] sm:$0xff]  ;;  %v229_v35 = vpack.c.bf16 %v202_v29, %v201_v28  ;;  %v236_v36 = vpack.c.bf16 %v216_v31, %v215_v30  ;;  %v203_v38 = vld [vmem:[%s1138_s28 + $0x50] sm:$0xff] }
  0x3a   : > { %826 = vmatpush3.bf16.msra.mxu0 %v936_v2  ;;  %879 = vmatpush3.bf16.msra.mxu1 %v936_v2  ;;  %v237_v37 = vpack.c.bf16 %v218_v33, %v217_v32  ;;  %v204_v39 = vld [vmem:[%s1138_s28 + $0x58] sm:$0xff]  ;;  %v205_v40 = vld [vmem:[%s1138_s28 + $0x60] sm:$0xff]  ;;  %v206_v41 = vld [vmem:[%s1138_s28 + $0x68] sm:$0xff] }
  0x3b   : > { %827 = vmatprep.subr.bf16.mxu0 %v937_v3  ;;  %872 = vmatprep.subr.bf16.mxu1 %v937_v3  ;;  %v219_v42 = vld [vmem:[%s1138_s28 + $0xd0] sm:$0xff]  ;;  %v220_v43 = vld [vmem:[%s1138_s28 + $0xd8] sm:$0xff]  ;;  %v221_v44 = vld [vmem:[%s1138_s28 + $0xe0] sm:$0xff]  ;;  %v230_v46 = vpack.c.bf16 %v204_v39, %v203_v38  ;;  %v231_v47 = vpack.c.bf16 %v206_v41, %v205_v40 }
  0x3c   : > { %v222_v45 = vld [vmem:[%s1138_s28 + $0xe8] sm:$0xff]  ;;  %v238_v48 = vpack.c.bf16 %v220_v43, %v219_v42  ;;  %v207_v50 = vld [vmem:[%s1138_s28 + $0x70] sm:$0xff]  ;;  %v208_v51 = vld [vmem:[%s1138_s28 + $0x78] sm:$0xff] }
  0x3d   : > { %v239_v49 = vpack.c.bf16 %v222_v45, %v221_v44  ;;  %v223_v52 = vld [vmem:[%s1138_s28 + $0xf0] sm:$0xff]  ;;  %v224_v53 = vld [vmem:[%s1138_s28 + $0xf8] sm:$0xff]  ;;  %v232_v54 = vpack.c.bf16 %v208_v51, %v207_v50 }
  0x3e   : > { %828 = vmatpush3.bf16.msra.mxu0 %v937_v3  ;;  %880 = vmatpush3.bf16.msra.mxu1 %v937_v3  ;;  %v240_v55 = vpack.c.bf16 %v224_v53, %v223_v52 }
  0x3f   : > { %829 = vmatprep.subr.bf16.mxu0 %v938_v7  ;;  %873 = vmatprep.subr.bf16.mxu1 %v938_v7 }
  0x42   : > { %830 = vmatpush3.bf16.msra.mxu0 %v938_v7  ;;  %881 = vmatpush3.bf16.msra.mxu1 %v938_v7 }
  0x43   : > { %831 = vmatprep.subr.bf16.mxu0 %v939_v11  ;;  %874 = vmatprep.subr.bf16.mxu1 %v939_v11 }
  0x46   : > { %832 = vmatpush3.bf16.msra.mxu0 %v939_v11  ;;  %882 = vmatpush3.bf16.msra.mxu1 %v939_v11 }
  0x47   : > { %833 = vmatprep.subr.bf16.mxu0 %v940_v12  ;;  %875 = vmatprep.subr.bf16.mxu1 %v940_v12 }
  0x4a   : > { %834 = vmatpush3.bf16.msra.mxu0 %v940_v12  ;;  %883 = vmatpush3.bf16.msra.mxu1 %v940_v12 }
  0x4b   : > { %835 = vmatprep.subr.bf16.mxu0 %v941_v13  ;;  %876 = vmatprep.subr.bf16.mxu1 %v941_v13 }
  0x4e   : > { %836 = vmatpush3.bf16.msra.mxu0 %v941_v13  ;;  %884 = vmatpush3.bf16.msra.mxu1 %v941_v13 }
  0x51   : > { %838 = vmatmul.mubr.bf16.vlgmr.msra.gmra.mxu0 %v226_v22  ;;  %854 = vmatmul.mubr.bf16.vlgmr.msra.gmra.mxu1 %v234_v24 }
  0x52   : > { %841 = vmatprep.mubr.bf16.mxu0 %v227_v23  ;;  %857 = vmatprep.mubr.bf16.mxu1 %v235_v25 }
  0x59   : > { %842 = vmatmul.mubr.bf16.gmra.mxu0 %v228_v34  ;;  %858 = vmatmul.mubr.bf16.gmra.mxu1 %v236_v36 }
  0x5a   : > { %845 = vmatprep.mubr.bf16.mxu0 %v229_v35  ;;  %861 = vmatprep.mubr.bf16.mxu1 %v237_v37 }
  0x61   : > { %846 = vmatmul.mubr.bf16.gmra.mxu0 %v230_v46  ;;  %862 = vmatmul.mubr.bf16.gmra.mxu1 %v238_v48 }
  0x62   : > { %849 = vmatprep.mubr.bf16.mxu0 %v231_v47  ;;  %865 = vmatprep.mubr.bf16.mxu1 %v239_v49 }
  0x69   : > { %850 = vmatmul.mubr.bf16.gmra.mxu0 %v232_v54  ;;  %866 = vmatmul.mubr.bf16.gmra.mxu1 %v240_v55 }
 0x111   : > { %v839_v56 = vpop.f32.mrf.mxu0  ;;  %v1208_v57 = vpop.f32.mrf.mxu1 }
 0x112   : > { %469 = vst.msk [vmem:[%s1204_s26 + $0x10] sm:$0xff] %vm466_vm0, %v839_v56  ;;  %485 = vst.msk [vmem:[%s1204_s26 + $0x90] sm:$0xff] %vm466_vm0, %v1208_v57  ;;  %v570_v0 = vmul.f32 %v839_v56, %v839_v56  ;;  %v502_v7 = vsel %vm466_vm0, %v839_v56, 0.0 }
 0x113   : > { %v339_v58 = vpop.f32.mrf.mxu0  ;;  %v1215_v59 = vpop.f32.mrf.mxu1 }
 0x114   : > { %467 = vst.msk [vmem:[%s1204_s26] sm:$0xff] %vm466_vm0, %v339_v58  ;;  %483 = vst.msk [vmem:[%s1204_s26 + $0x80] sm:$0xff] %vm466_vm0, %v1215_v59  ;;  %v568_v61 = vmul.f32 %v339_v58, %v339_v58  ;;  %v499_v1 = vsel %vm466_vm0, %v339_v58, 0.0  ;;  %v603_v15 = vsel %vm466_vm0, %v570_v0, 0.0 }
 0x115   : > { %v840_v60 = vpop.f32.mrf.mxu0  ;;  %v1222_v62 = vpop.f32.mrf.mxu1 }
 0x116   : > { %470 = vst.msk [vmem:[%s1204_s26 + $0x18] sm:$0xff] %vm466_vm0, %v840_v60  ;;  %486 = vst.msk [vmem:[%s1204_s26 + $0x98] sm:$0xff] %vm466_vm0, %v1222_v62  ;;  %v600_v8 = vsel %vm466_vm0, %v568_v61, 0.0  ;;  %v571_v9 = vmul.f32 %v840_v60, %v840_v60  ;;  %v504_v16 = vsel %vm466_vm0, %v840_v60, 0.0 }
 0x117   : > { %v342_v63 = vpop.f32.mrf.mxu0  ;;  %v1231_v4 = vpop.f32.mrf.mxu1 }
 0x118   : > { %468 = vst.msk [vmem:[%s1204_s26 + $0x8] sm:$0xff] %vm466_vm0, %v342_v63  ;;  %v500_v2 = vsel %vm466_vm0, %v342_v63, 0.0  ;;  %v569_v3 = vmul.f32 %v342_v63, %v342_v63  ;;  %484 = vst.msk [vmem:[%s1204_s26 + $0x88] sm:$0xff] %vm466_vm0, %v1231_v4  ;;  %v605_v22 = vsel %vm466_vm0, %v571_v9, 0.0 }
 0x119   : > { %v501_v5 = vadd.f32 %v500_v2, %v499_v1  ;;  %v843_v6 = vpop.f32.mrf.mxu0  ;;  %v1241_v11 = vpop.f32.mrf.mxu1 }
 0x11a   : > { %v601_v10 = vsel %vm466_vm0, %v569_v3, 0.0  ;;  %473 = vst.msk [vmem:[%s1204_s26 + $0x30] sm:$0xff] %vm466_vm0, %v843_v6  ;;  %489 = vst.msk [vmem:[%s1204_s26 + $0xb0] sm:$0xff] %vm466_vm0, %v1241_v11  ;;  %v574_v28 = vmul.f32 %v843_v6, %v843_v6  ;;  %v510_v36 = vsel %vm466_vm0, %v843_v6, 0.0 }
 0x11b   : > { %v503_v12 = vadd.f32 %v502_v7, %v501_v5  ;;  %v602_v13 = vadd.f32 %v601_v10, %v600_v8  ;;  %v355_v14 = vpop.f32.mrf.mxu0  ;;  %v1250_v18 = vpop.f32.mrf.mxu1 }
 0x11c   : > { %471 = vst.msk [vmem:[%s1204_s26 + $0x20] sm:$0xff] %vm466_vm0, %v355_v14  ;;  %v572_v17 = vmul.f32 %v355_v14, %v355_v14  ;;  %487 = vst.msk [vmem:[%s1204_s26 + $0xa0] sm:$0xff] %vm466_vm0, %v1250_v18  ;;  %v506_v23 = vsel %vm466_vm0, %v355_v14, 0.0  ;;  %v611_v43 = vsel %vm466_vm0, %v574_v28, 0.0 }
 0x11d   : > { %v604_v19 = vadd.f32 %v603_v15, %v602_v13  ;;  %v505_v20 = vadd.f32 %v504_v16, %v503_v12  ;;  %v844_v21 = vpop.f32.mrf.mxu0  ;;  %v1259_v24 = vpop.f32.mrf.mxu1 }
 0x11e   : > { %474 = vst.msk [vmem:[%s1204_s26 + $0x38] sm:$0xff] %vm466_vm0, %v844_v21  ;;  %490 = vst.msk [vmem:[%s1204_s26 + $0xb8] sm:$0xff] %vm466_vm0, %v1259_v24  ;;  %v607_v29 = vsel %vm466_vm0, %v572_v17, 0.0  ;;  %v575_v37 = vmul.f32 %v844_v21, %v844_v21  ;;  %v512_v44 = vsel %vm466_vm0, %v844_v21, 0.0 }
 0x11f   : > { %v507_v25 = vadd.f32 %v506_v23, %v505_v20  ;;  %v606_v26 = vadd.f32 %v605_v22, %v604_v19  ;;  %v358_v27 = vpop.f32.mrf.mxu0  ;;  %v1268_v32 = vpop.f32.mrf.mxu1 }
 0x120   : > { %472 = vst.msk [vmem:[%s1204_s26 + $0x28] sm:$0xff] %vm466_vm0, %v358_v27  ;;  %v508_v30 = vsel %vm466_vm0, %v358_v27, 0.0  ;;  %v573_v31 = vmul.f32 %v358_v27, %v358_v27  ;;  %488 = vst.msk [vmem:[%s1204_s26 + $0xa8] sm:$0xff] %vm466_vm0, %v1268_v32  ;;  %v613_v50 = vsel %vm466_vm0, %v575_v37, 0.0 }
 0x121   : > { %v608_v33 = vadd.f32 %v607_v29, %v606_v26  ;;  %v509_v34 = vadd.f32 %v508_v30, %v507_v25  ;;  %v847_v35 = vpop.f32.mrf.mxu0  ;;  %v1277_v39 = vpop.f32.mrf.mxu1 }
 0x122   : > { %v609_v38 = vsel %vm466_vm0, %v573_v31, 0.0  ;;  %477 = vst.msk [vmem:[%s1204_s26 + $0x50] sm:$0xff] %vm466_vm0, %v847_v35  ;;  %493 = vst.msk [vmem:[%s1204_s26 + $0xd0] sm:$0xff] %vm466_vm0, %v1277_v39  ;;  %v578_v56 = vmul.f32 %v847_v35, %v847_v35  ;;  %v518_v3 = vsel %vm466_vm0, %v847_v35, 0.0 }
 0x123   : > { %v511_v40 = vadd.f32 %v510_v36, %v509_v34  ;;  %v610_v41 = vadd.f32 %v609_v38, %v608_v33  ;;  %v371_v42 = vpop.f32.mrf.mxu0  ;;  %v1286_v46 = vpop.f32.mrf.mxu1 }
 0x124   : > { %475 = vst.msk [vmem:[%s1204_s26 + $0x40] sm:$0xff] %vm466_vm0, %v371_v42  ;;  %v576_v45 = vmul.f32 %v371_v42, %v371_v42  ;;  %491 = vst.msk [vmem:[%s1204_s26 + $0xc0] sm:$0xff] %vm466_vm0, %v1286_v46  ;;  %v514_v51 = vsel %vm466_vm0, %v371_v42, 0.0  ;;  %v619_v12 = vsel %vm466_vm0, %v578_v56, 0.0 }
 0x125   : > { %v612_v47 = vadd.f32 %v611_v43, %v610_v41  ;;  %v513_v48 = vadd.f32 %v512_v44, %v511_v40  ;;  %v848_v49 = vpop.f32.mrf.mxu0  ;;  %v1295_v52 = vpop.f32.mrf.mxu1  ;;  %v584_v43 = vmul.f32 %v1215_v59, %v1215_v59 }
 0x126   : > { %478 = vst.msk [vmem:[%s1204_s26 + $0x58] sm:$0xff] %vm466_vm0, %v848_v49  ;;  %494 = vst.msk [vmem:[%s1204_s26 + $0xd8] sm:$0xff] %vm466_vm0, %v1295_v52  ;;  %v615_v58 = vsel %vm466_vm0, %v576_v45, 0.0  ;;  %v579_v5 = vmul.f32 %v848_v49, %v848_v49  ;;  %v520_v13 = vsel %vm466_vm0, %v848_v49, 0.0  ;;  %v585_v49 = vmul.f32 %v1231_v4, %v1231_v4 }
 0x127   : > { %v515_v53 = vadd.f32 %v514_v51, %v513_v48  ;;  %v614_v54 = vadd.f32 %v613_v50, %v612_v47  ;;  %v374_v55 = vpop.f32.mrf.mxu0  ;;  %v1304_v63 = vpop.f32.mrf.mxu1  ;;  %v530_v48 = vsel %vm466_vm0, %v1215_v59, 0.0  ;;  %v587_v59 = vmul.f32 %v1222_v62, %v1222_v62 }
 0x128   : > { %476 = vst.msk [vmem:[%s1204_s26 + $0x48] sm:$0xff] %vm466_vm0, %v374_v55  ;;  %v516_v60 = vsel %vm466_vm0, %v374_v55, 0.0  ;;  %v577_v61 = vmul.f32 %v374_v55, %v374_v55  ;;  %492 = vst.msk [vmem:[%s1204_s26 + $0xc8] sm:$0xff] %vm466_vm0, %v1304_v63  ;;  %v621_v20 = vsel %vm466_vm0, %v579_v5, 0.0  ;;  %v532_v55 = vsel %vm466_vm0, %v1231_v4, 0.0 }
 0x129   : > { %v616_v0 = vadd.f32 %v615_v58, %v614_v54  ;;  %v517_v1 = vadd.f32 %v516_v60, %v515_v53  ;;  %v851_v2 = vpop.f32.mrf.mxu0  ;;  %v1313_v7 = vpop.f32.mrf.mxu1  ;;  %v586_v53 = vmul.f32 %v1208_v57, %v1208_v57  ;;  %v631_v54 = vsel %vm466_vm0, %v584_v43, 0.0 }
 0x12a   : > { %v617_v6 = vsel %vm466_vm0, %v577_v61, 0.0  ;;  %481 = vst.msk [vmem:[%s1204_s26 + $0x70] sm:$0xff] %vm466_vm0, %v851_v2  ;;  %497 = vst.msk [vmem:[%s1204_s26 + $0xf0] sm:$0xff] %vm466_vm0, %v1313_v7  ;;  %v582_v27 = vmul.f32 %v851_v2, %v851_v2  ;;  %v526_v35 = vsel %vm466_vm0, %v851_v2, 0.0  ;;  %v534_v60 = vsel %vm466_vm0, %v1208_v57, 0.0 }
 0x12b   : > { %v519_v8 = vadd.f32 %v518_v3, %v517_v1  ;;  %v618_v9 = vadd.f32 %v617_v6, %v616_v0  ;;  %v387_v10 = vpop.f32.mrf.mxu0  ;;  %v1322_v15 = vpop.f32.mrf.mxu1  ;;  %v633_v61 = vsel %vm466_vm0, %v585_v49, 0.0  ;;  %v635_v2 = vsel %vm466_vm0, %v586_v53, 0.0 }
 0x12c   : > { %479 = vst.msk [vmem:[%s1204_s26 + $0x60] sm:$0xff] %vm466_vm0, %v387_v10  ;;  %v580_v14 = vmul.f32 %v387_v10, %v387_v10  ;;  %495 = vst.msk [vmem:[%s1204_s26 + $0xe0] sm:$0xff] %vm466_vm0, %v1322_v15  ;;  %v522_v21 = vsel %vm466_vm0, %v387_v10, 0.0  ;;  %v627_v41 = vsel %vm466_vm0, %v582_v27, 0.0  ;;  %v536_v3 = vsel %vm466_vm0, %v1222_v62, 0.0 }
 0x12d   : > { %v620_v16 = vadd.f32 %v619_v12, %v618_v9  ;;  %v521_v17 = vadd.f32 %v520_v13, %v519_v8  ;;  %v852_v19 = vpop.f32.mrf.mxu0  ;;  %v1331_v22 = vpop.f32.mrf.mxu1  ;;  %v588_v4 = vmul.f32 %v1250_v18, %v1250_v18  ;;  %v637_v8 = vsel %vm466_vm0, %v587_v59, 0.0 }
 0x12e   : > { %482 = vst.msk [vmem:[%s1204_s26 + $0x78] sm:$0xff] %vm466_vm0, %v852_v19  ;;  %498 = vst.msk [vmem:[%s1204_s26 + $0xf8] sm:$0xff] %vm466_vm0, %v1331_v22  ;;  %v623_v28 = vsel %vm466_vm0, %v580_v14, 0.0  ;;  %v583_v36 = vmul.f32 %v852_v19, %v852_v19  ;;  %v528_v42 = vsel %vm466_vm0, %v852_v19, 0.0  ;;  %v538_v57 = vsel %vm466_vm0, %v1250_v18, 0.0 }
 0x12f   : > { %v523_v23 = vadd.f32 %v522_v21, %v521_v17  ;;  %v622_v25 = vadd.f32 %v621_v20, %v620_v16  ;;  %v390_v26 = vpop.f32.mrf.mxu0  ;;  %v1340_v31 = vpop.f32.mrf.mxu1  ;;  %v589_v9 = vmul.f32 %v1268_v32, %v1268_v32  ;;  %v590_v13 = vmul.f32 %v1241_v11, %v1241_v11 }
 0x130   : > { %480 = vst.msk [vmem:[%s1204_s26 + $0x68] sm:$0xff] %vm466_vm0, %v390_v26  ;;  %v524_v29 = vsel %vm466_vm0, %v390_v26, 0.0  ;;  %v581_v30 = vmul.f32 %v390_v26, %v390_v26  ;;  %496 = vst.msk [vmem:[%s1204_s26 + $0xe8] sm:$0xff] %vm466_vm0, %v1340_v31  ;;  %v629_v47 = vsel %vm466_vm0, %v583_v36, 0.0  ;;  %v639_v62 = vsel %vm466_vm0, %v588_v4, 0.0 }
 0x131   : > { %v624_v33 = vadd.f32 %v623_v28, %v622_v25  ;;  %v525_v34 = vadd.f32 %v524_v29, %v523_v23  ;;  %v540_v14 = vsel %vm466_vm0, %v1268_v32, 0.0  ;;  %v542_v19 = vsel %vm466_vm0, %v1241_v11, 0.0 }
 0x132   : > { %v625_v37 = vsel %vm466_vm0, %v581_v30, 0.0  ;;  %v591_v18 = vmul.f32 %v1259_v24, %v1259_v24  ;;  %v641_v20 = vsel %vm466_vm0, %v589_v9, 0.0  ;;  %v643_v25 = vsel %vm466_vm0, %v590_v13, 0.0 }
 0x133   : > { %v527_v38 = vadd.f32 %v526_v35, %v525_v34  ;;  %v626_v40 = vadd.f32 %v625_v37, %v624_v33  ;;  %v544_v26 = vsel %vm466_vm0, %v1259_v24, 0.0  ;;  %v592_v32 = vmul.f32 %v1286_v46, %v1286_v46 }
 0x134   : > { %v645_v29 = vsel %vm466_vm0, %v591_v18, 0.0  ;;  %v546_v11 = vsel %vm466_vm0, %v1286_v46, 0.0  ;;  %v593_v30 = vmul.f32 %v1304_v63, %v1304_v63  ;;  %v594_v35 = vmul.f32 %v1277_v39, %v1277_v39 }
 0x135   : > { %v529_v44 = vadd.f32 %v528_v42, %v527_v38  ;;  %v628_v45 = vadd.f32 %v627_v41, %v626_v40  ;;  %v647_v24 = vsel %vm466_vm0, %v592_v32, 0.0  ;;  %v548_v36 = vsel %vm466_vm0, %v1304_v63, 0.0 }
 0x136   : > { %v550_v40 = vsel %vm466_vm0, %v1277_v39, 0.0  ;;  %v595_v46 = vmul.f32 %v1295_v52, %v1295_v52  ;;  %v649_v41 = vsel %vm466_vm0, %v593_v30, 0.0  ;;  %v596_v63 = vmul.f32 %v1322_v15, %v1322_v15 }
 0x137   : > { %v630_v50 = vadd.f32 %v629_v47, %v628_v45  ;;  %v531_v51 = vadd.f32 %v530_v48, %v529_v44  ;;  %v651_v44 = vsel %vm466_vm0, %v594_v35, 0.0  ;;  %v552_v45 = vsel %vm466_vm0, %v1295_v52, 0.0 }
 0x138   : > { %v653_v49 = vsel %vm466_vm0, %v595_v46, 0.0  ;;  %v554_v39 = vsel %vm466_vm0, %v1322_v15, 0.0  ;;  %v655_v52 = vsel %vm466_vm0, %v596_v63, 0.0  ;;  %v599_v15 = vmul.f32 %v1331_v22, %v1331_v22 }
 0x139   : > { %v533_v56 = vadd.f32 %v532_v55, %v531_v51  ;;  %v632_v58 = vadd.f32 %v631_v54, %v630_v50  ;;  %v597_v50 = vmul.f32 %v1340_v31, %v1340_v31  ;;  %v598_v54 = vmul.f32 %v1313_v7, %v1313_v7 }
 0x13a   : > { %v556_v55 = vsel %vm466_vm0, %v1340_v31, 0.0  ;;  %v661_v31 = vsel %vm466_vm0, %v599_v15, 0.0 }
 0x13b   : > { %v535_v0 = vadd.f32 %v534_v60, %v533_v56  ;;  %v634_v1 = vadd.f32 %v633_v61, %v632_v58  ;;  %v558_v60 = vsel %vm466_vm0, %v1313_v7, 0.0  ;;  %v657_v59 = vsel %vm466_vm0, %v597_v50, 0.0 }
 0x13d   : > { %v636_v5 = vadd.f32 %v635_v2, %v634_v1  ;;  %v537_v6 = vadd.f32 %v536_v3, %v535_v0  ;;  %v659_v1 = vsel %vm466_vm0, %v598_v54, 0.0  ;;  %v560_v2 = vsel %vm466_vm0, %v1331_v22, 0.0 }
 0x13f   : > { %v539_v10 = vadd.f32 %v538_v57, %v537_v6  ;;  %v638_v12 = vadd.f32 %v637_v8, %v636_v5 }
 0x141   : > { %v640_v16 = vadd.f32 %v639_v62, %v638_v12  ;;  %v541_v17 = vadd.f32 %v540_v14, %v539_v10 }
 0x143   : > { %v543_v21 = vadd.f32 %v542_v19, %v541_v17  ;;  %v642_v23 = vadd.f32 %v641_v20, %v640_v16 }
 0x145   : > { %v644_v27 = vadd.f32 %v643_v25, %v642_v23  ;;  %v545_v28 = vadd.f32 %v544_v26, %v543_v21 }
 0x147   : > { %v547_v33 = vadd.f32 %v546_v11, %v545_v28  ;;  %v646_v34 = vadd.f32 %v645_v29, %v644_v27 }
 0x149   : > { %v648_v37 = vadd.f32 %v647_v24, %v646_v34  ;;  %v549_v38 = vadd.f32 %v548_v36, %v547_v33 }
 0x14b   : > { %v551_v42 = vadd.f32 %v550_v40, %v549_v38  ;;  %v650_v43 = vadd.f32 %v649_v41, %v648_v37 }
 0x14d   : > { %v652_v47 = vadd.f32 %v651_v44, %v650_v43  ;;  %v553_v48 = vadd.f32 %v552_v45, %v551_v42 }
 0x14f   : > { %v555_v51 = vadd.f32 %v554_v39, %v553_v48  ;;  %v654_v53 = vadd.f32 %v653_v49, %v652_v47 }
 0x151   : > { %v656_v56 = vadd.f32 %v655_v52, %v654_v53  ;;  %v557_v58 = vadd.f32 %v556_v55, %v555_v51 }
 0x153   : > { %v559_v61 = vadd.f32 %v558_v60, %v557_v58  ;;  %v658_v0 = vadd.f32 %v657_v59, %v656_v56 }
 0x155   : > { %v561_v3 = vadd.f32 %v560_v2, %v559_v61  ;;  %v660_v4 = vadd.f32 %v659_v1, %v658_v0 }
 0x157   : > { %v562_v5 = vrot.slane %v561_v3, 4  ;;  %v662_v6 = vadd.f32 %v661_v31, %v660_v4 }
 0x159   : > { %v563_v8 = vadd.f32 %v562_v5, %v561_v3  ;;  %v663_v7 = vrot.slane %v662_v6, 4 }
 0x15b   : > { %v564_v57 = vrot.slane %v563_v8, 2  ;;  %v664_v9 = vadd.f32 %v663_v7, %v662_v6 }
 0x15d   : > { %v565_v10 = vadd.f32 %v564_v57, %v563_v8  ;;  %v665_v12 = vrot.slane %v664_v9, 2 }
 0x15f   : > { %v566_v13 = vrot.slane %v565_v10, 1  ;;  %v666_v62 = vadd.f32 %v665_v12, %v664_v9 }
 0x161   : > { %v667_v14 = vrot.slane %v666_v62, 1  ;;  %v567_v16 = vadd.f32 %v566_v13, %v565_v10  ;;  %674 = sbr.rel (%p791_p9) target bundleno = 360 (0x168), region = 36 }
 0x163   : > { %v668_v17 = vadd.f32 %v667_v14, %v666_v62 }
 0x165   : > { %v670_v19 = vsel %vm669_vm1, %v567_v16, %v668_v17 }
 0x166   : > { %vm675_vm2 = vcmask 254976   ;;  %v1037_v22 = vmov 0.0  }
 0x167   : > { %676 = vst.msk [vmem:[#allocation5] sm:$0x3] %vm675_vm2, %v1037_v22 }
 0x168 PF: > { %vm679_vm3 = vcmask 254976   ;;  %p896_p1 = scmp.eq.s32.totalorder %s1078_s16, 1  ;;  %s1038_s28 = smov [#allocation5]  }
 0x169   : > { %s697_s5 = sshll.u32 %s1038_s28, 4  ;;  %s698_s5 = int_to_ptr.vmem [resolvable:$true] %s697_s5 }
 0x16a   : > { %s970_s6 = scalar_lea.vmem %s698_s5, 32  ;;  %p977_p5 = scmp.lt.s32.totalorder %s698_s5, %s698_s5 }
 0x16b   : > { %p971_p2 = scmp.ne.s32.totalorder %s698_s5, %s970_s6  ;;  %p978_p6 = scmp.lt.s32.totalorder %s970_s6, %s970_s6 }
 0x16d   : > { %p972_p3 = pnand %p971_p2, %p896_p1  ;;  %p979_p10 = por %p978_p6, %p977_p5 }
 0x16e   : > { %v677_v18 = vld [vmem:[#allocation5] sm:$0x3] }
 0x16f   : > { %v678_v20 = vadd.f32 %v677_v18, %v670_v19  ;;  %p973_p4 = pneg %p972_p3 }
 0x171   : > { %680 = vst.msk [vmem:[#allocation5] sm:$0x3] %vm679_vm3, %v678_v20  ;;  %p980_p12 = pnand %p979_p10, %p973_p4 }
 0x173   : > { %983 = shalt.err (!%p980_p12)
}
 0x174   : > { %888 = dma.vmem_to_hbm [thread:$0]  (%p896_p1), %s698_s5, 32, %s1459_s3, [#allocation4]  }
 0x175   : > { %1015 = dma.done.wait (%p896_p1), [#allocation4], 32  }
 0x176   : > { %1017 = vsyncadd (%p896_p1), [#allocation4], 4294967264 }
 0x177 PF: > { %p15_p11 = scmp.ge.s32.totalorder %s1081_s17, 4   ;;  %s1465_s12 = smov %s1024_s13 }
 0x178   : > { %s1466_s13 = smov %s1028_s14  ;;  %s1467_s14 = smov %s1091_s20 }
 0x179   : > { %s1468_s15 = smov %s1081_s17  ;;  %17 = sbr.rel (!%p15_p11) target bundleno = 4 (0x4), region = 81 }
 0x17e   :  { %718 = vsyncpa [#allocation3], 1 }
 0x17f   :  { %720 = vsyncpa [#allocation3 + $0x1], 1 }
 0x180   :  { %721 = vsyncpa [#allocation4], 1 }
 0x181   :  { %723 = vsyncpa [#allocation4 + $0x1], 1 }

</bundles_post_ra>
